<compile_context>
chip_gen: v5e
topology: v5e:2x2
jax: 0.10.0
libtpu: 0.0.40
codegen_flags: <defaults>
</compile_context>

<pallas_src>
import jax
import jax.numpy as jnp
from jax import lax
from jax.experimental import pallas as pl
from jax.experimental.pallas import tpu as pltpu


def _round_up(x, m):
    return ((x + m - 1) // m) * m


def _vmem_budget_bytes():
    """Generation-gated scoped-VMEM request.

    v7x-class parts have 64 MiB of VMEM per TensorCore -> stay <= ~42 MiB so
    the pipeline keeps full double buffering; v5e/v6e have 128 MiB -> allow up
    to 96 MiB so the full-K-resident weight and large M tiles fit.  Unknown
    parts get the conservative number.
    """
    cap = None
    try:
        info = pltpu.get_tpu_info()
        cap = getattr(info, "vmem_capacity_bytes", None)
        cap = int(cap) if cap else None
    except Exception:
        cap = None
    if cap is None:
        return 42 * 1024 * 1024
    if cap <= 96 * 1024 * 1024:
        return min(42 * 1024 * 1024, int(cap * 0.65))
    return 96 * 1024 * 1024


def _tensorcore_count():
    """2 on parts exposing two TensorCores to one program (v7x; v4/v5p
    megacore), 1 on v5e/v6e.  Gates the leading 'parallel' split axis: on
    single-TC parts the split only fragments the BN partial sums."""
    try:
        info = pltpu.get_tpu_info()
        for name in ("num_cores", "core_count", "num_tensorcores",
                     "tensorcore_count"):
            val = getattr(info, name, None)
            if isinstance(val, int) and val > 0:
                return val
    except Exception:
        pass
    try:
        kind = jax.devices()[0].device_kind.lower()
    except Exception:
        return 1
    if any(tag in kind for tag in ("v7", "7x", "v4", "v5p")):
        return 2
    return 1


def conv_stats_kernel_resident(p_ref, w_ref, y_ref, sum_ref, sq_ref):
    """Full-K conv-as-matmul (bf16 operands, f32 MXU accumulation) + BN
    batch-stat partial sums.  Grid: (split, m).

    The weight block index is constant, so it is DMA'd once and stays
    VMEM-resident; there is no accumulator scratch / read-modify-write.

    NOTE: the stats output blocks are indexed only by the split axis and are
    accumulated in place across the m axis, so the m axis MUST stay
    "arbitrary" and the stats index_map must not be made m-dependent.
    """
    m = pl.program_id(1)

    @pl.when(m == 0)
    def _():
        sum_ref[...] = jnp.zeros_like(sum_ref)
        sq_ref[...] = jnp.zeros_like(sq_ref)

    y = jnp.dot(p_ref[...], w_ref[...], preferred_element_type=jnp.float32)
    y_ref[...] = y.astype(y_ref.dtype)          # bf16 store: halves y traffic

    # Per-channel partial sums spread over the 8 sublane rows of the stats
    # block: reducing the leading axis of (tm//8, 8, C) is pure VPU adds (no
    # cross-sublane XLU work).  The host glue collapses the 8 rows.
    tm_, cp_ = y.shape
    y3 = y.reshape(tm_ // 8, 8, cp_)
    sum_ref[...] += jnp.sum(y3, axis=0)
    sq_ref[...] += jnp.sum(y3 * y3, axis=0)


def conv_stats_kernel_blocked(p_ref, w_ref, y_ref, sum_ref, sq_ref, acc_ref):
    """K-blocked fallback (only used when the full-K operands do not fit the
    scoped-VMEM budget).  Grid: (split, m, k), k innermost.

    Same stats contract as the resident kernel: the m and k axes MUST stay
    "arbitrary" (block-resident accumulation across both)."""
    m = pl.program_id(1)
    k = pl.program_id(2)
    nk = pl.num_programs(2)

    @pl.when(k == 0)
    def _():
        acc_ref[...] = jnp.zeros_like(acc_ref)

    acc_ref[...] += jnp.dot(p_ref[...], w_ref[...],
                            preferred_element_type=jnp.float32)

    @pl.when(jnp.logical_and(m == 0, k == 0))
    def _():
        sum_ref[...] = jnp.zeros_like(sum_ref)
        sq_ref[...] = jnp.zeros_like(sq_ref)

    @pl.when(k == nk - 1)
    def _():
        y = acc_ref[...]
        y_ref[...] = y.astype(y_ref.dtype)
        tm_, cp_ = y.shape
        y3 = y.reshape(tm_ // 8, 8, cp_)
        sum_ref[...] += jnp.sum(y3, axis=0)
        sq_ref[...] += jnp.sum(y3 * y3, axis=0)


def bn_lrelu_nchw_kernel(y_ref, scale_ref, shift_ref, o_ref):
    """Folded BatchNorm (y*scale + shift) + LeakyReLU(0.2), writing the
    channel-major (NCHW) layout directly.  Input lane dim = cout_p >= 128 and
    output lane dim = spatial tile >= 128, so both sides stay lane-dense
    (unmasked vst)."""
    z = y_ref[...].astype(jnp.float32) * scale_ref[...] + shift_ref[...]
    z = jnp.where(z >= 0, z, 0.2 * z)
    o_ref[0] = z.T                       # (cout_p, tm) block of (N, C, S_p)


def unet_block_forward(x, w, gamma, beta, *, tm=512, tk_max=2048, eps=1e-5):
    N, Cin, H, W = x.shape
    Cout = w.shape[0]
    Kh = Kw = 4
    Ho, Wo = H // 2, W // 2
    S = Ho * Wo                    # true spatial positions per sample
    M = N * S                      # true rows (BatchNorm divisor)
    K = Cin * Kh * Kw

    # Lane-dense / MXU-friendly padded sizes.  NOTE: on v6e/v7x the MXU result
    # dim is 256 wide, so cout_p=128 (small Cout) fills only half the array;
    # accepted utilization hit for small layers, not a tiling bug.
    cout_p = _round_up(Cout, 128)
    k_p_full = _round_up(K, 128)
    # Per-sample padded spatial extent: lets kernel 2 write NCHW blocks whose
    # lane dim is the spatial tile, and keeps every M tile inside one sample.
    s_p = _round_up(S, 128)

    budget = _vmem_budget_bytes()
    usable = int(budget * 0.85)

    # ---- M tile: largest multiple of 128 that divides s_p and fits VMEM ----
    tm_req = _round_up(min(max(tm, 128), s_p), 128)
    q = s_p // 128
    tm_candidates = sorted({128 * d for d in range(1, q + 1)
                            if q % d == 0 and 128 * d <= tm_req}, reverse=True)

    def _est_resident(tm_):
        return (2 * tm_ * k_p_full * 2       # patches tile, double-buffered bf16
                + 2 * k_p_full * cout_p * 2  # resident weight (buffer pair)
                + 2 * tm_ * cout_p * 2       # bf16 y tile, double-buffered
                + 4 * 8 * cout_p * 4         # two (8, C) f32 stats blocks
                + (2 << 20))                 # compiler slack

    resident = False
    tm_sel = tm_candidates[-1]
    k_p = k_p_full
    tk = k_p_full
    for cand in tm_candidates:
        if _est_resident(cand) <= usable:
            tm_sel, resident = cand, True
            break
    if not resident:
        # Huge Cin*Cout only: fall back to K blocking with an f32 accumulator.
        tm_sel = tm_candidates[-1]
        tk = _round_up(min(tk_max, k_p_full), 128)
        while tk > 128 and (2 * tm_sel * tk * 2 + 2 * tk * cout_p * 2
                            + 2 * tm_sel * cout_p * 2 + 4 * 8 * cout_p * 4
                            + tm_sel * cout_p * 4 + (2 << 20)) > usable:
            tk -= 128
        k_p = _round_up(K, tk)

    spm = s_p // tm_sel                  # m-tiles per sample
    grid_m_total = N * spm
    n_split = 2 if (_tensorcore_count() >= 2 and grid_m_total >= 2
                    and grid_m_total % 2 == 0) else 1
    grid_m = grid_m_total // n_split

    # ---- im2col in bf16 (XLA layout glue) ----
    # TODO(synk): this still materializes a ~4x-input-volume (M, K) array in
    # HBM (one extra write + read).  Next step: stream the 16 conv taps from a
    # space-to-depth padded-NHWC view of x inside kernel 1 (per-sample
    # VMEM-resident block + in-kernel tap slices), or route the producer
    # through CompilerParams(allow_input_fusion=...) once verified on-target.
    xb = x.astype(jnp.bfloat16)
    wb = w.astype(jnp.bfloat16)
    xp = jnp.pad(xb, ((0, 0), (0, 0), (1, 1), (1, 1)))
    cols = [xp[:, :, kh:kh + 2 * Ho:2, kw:kw + 2 * Wo:2]
            for kh in range(Kh) for kw in range(Kw)]
    patches = jnp.stack(cols, axis=-1)                         # (N, Cin, Ho, Wo, 16)
    patches = patches.transpose(0, 2, 3, 1, 4).reshape(N, S, K)
    patches = jnp.pad(patches, ((0, 0), (0, s_p - S), (0, k_p - K)))
    patches = patches.reshape(N * s_p, k_p)                    # zero pad: no effect

    w2d = wb.reshape(Cout, K).T                                # (K, Cout) bf16
    w2d = jnp.pad(w2d, ((0, k_p - K), (0, cout_p - Cout)))

    # ---- kernel 1: conv matmul + per-split BN-stat partial sums ----
    y_shape = jax.ShapeDtypeStruct((N * s_p, cout_p), jnp.bfloat16)
    stats_shape = jax.ShapeDtypeStruct((n_split * 8, cout_p), jnp.float32)

    if resident:
        grid = (n_split, grid_m)
        in_specs = [
            pl.BlockSpec((tm_sel, k_p), lambda s, m, gm=grid_m: (s * gm + m, 0)),
            pl.BlockSpec((k_p, cout_p), lambda s, m: (0, 0)),   # constant -> DMA'd once
        ]
        out_specs = (
            pl.BlockSpec((tm_sel, cout_p), lambda s, m, gm=grid_m: (s * gm + m, 0)),
            pl.BlockSpec((8, cout_p), lambda s, m: (s, 0)),
            pl.BlockSpec((8, cout_p), lambda s, m: (s, 0)),
        )
        scratch = []
        kernel1 = conv_stats_kernel_resident
        # split axis "parallel" (2-TC parts); m MUST stay "arbitrary" because
        # the stats blocks accumulate in place across it.
        dim_sem = ("parallel", "arbitrary")
    else:
        grid = (n_split, grid_m, k_p // tk)
        in_specs = [
            pl.BlockSpec((tm_sel, tk), lambda s, m, k, gm=grid_m: (s * gm + m, k)),
            pl.BlockSpec((tk, cout_p), lambda s, m, k: (k, 0)),
        ]
        out_specs = (
            pl.BlockSpec((tm_sel, cout_p), lambda s, m, k, gm=grid_m: (s * gm + m, 0)),
            pl.BlockSpec((8, cout_p), lambda s, m, k: (s, 0)),
            pl.BlockSpec((8, cout_p), lambda s, m, k: (s, 0)),
        )
        scratch = [pltpu.VMEM((tm_sel, cout_p), jnp.float32)]
        kernel1 = conv_stats_kernel_blocked
        # m and k MUST stay "arbitrary" (stats / accumulator block residency).
        dim_sem = ("parallel", "arbitrary", "arbitrary")
        # TODO(synk): on v5e consider pipeline_mode=pl.Buffered(3) on the
        # patches spec if a trace shows exposed DMA on this fallback path.

    y, s_part, sq_part = pl.pallas_call(
        kernel1,
        out_shape=(y_shape, stats_shape, stats_shape),
        grid_spec=pltpu.PrefetchScalarGridSpec(
            num_scalar_prefetch=0,
            grid=grid,
            in_specs=in_specs,
            out_specs=out_specs,
            scratch_shapes=scratch),
        compiler_params=pltpu.CompilerParams(
            dimension_semantics=dim_sem,
            vmem_limit_bytes=budget),
    )(patches, w2d)

    # ---- scalar glue: finalize training-mode BatchNorm parameters ----
    # Zero-padded rows / channels contribute exactly zero to the partial sums,
    # so dividing by the true element count M is correct.
    cnt = jnp.float32(M)
    mean = jnp.sum(s_part, axis=0) / cnt
    var = jnp.sum(sq_part, axis=0) / cnt - mean * mean   # biased (training BN)
    var = jnp.maximum(var, 0.0)   # guard E[y^2]-E[y]^2 cancellation
    # TODO(synk): switch to a shifted / two-pass variance if production sizes
    # need tighter accuracy than the single-pass formula.
    invstd = lax.rsqrt(var + eps)
    gamma_p = jnp.zeros((cout_p,), jnp.float32).at[:Cout].set(gamma.astype(jnp.float32))
    beta_p = jnp.zeros((cout_p,), jnp.float32).at[:Cout].set(beta.astype(jnp.float32))
    scale = (gamma_p * invstd).reshape(1, cout_p)
    shift = (beta_p - mean * gamma_p * invstd).reshape(1, cout_p)

    # ---- kernel 2: folded BN + LeakyReLU, fused NCHW write ----
    out_nc = pl.pallas_call(
        bn_lrelu_nchw_kernel,
        out_shape=jax.ShapeDtypeStruct((N, cout_p, s_p), jnp.float32),
        grid_spec=pltpu.PrefetchScalarGridSpec(
            num_scalar_prefetch=0,
            grid=(N, spm),
            in_specs=[
                pl.BlockSpec((tm_sel, cout_p), lambda n, s, sp=spm: (n * sp + s, 0)),
                pl.BlockSpec((1, cout_p), lambda n, s: (0, 0)),
                pl.BlockSpec((1, cout_p), lambda n, s: (0, 0)),
            ],
            out_specs=pl.BlockSpec((1, cout_p, tm_sel), lambda n, s: (n, 0, s))),
        compiler_params=pltpu.CompilerParams(
            dimension_semantics=("parallel", "parallel"),
            vmem_limit_bytes=budget),
    )(y, scale, shift)

    # Free reshape when Cout and Ho*Wo are already 128-aligned (typical
    # production layers); otherwise one small XLA slice of the final output.
    return out_nc[:, :Cout, :S].reshape(N, Cout, Ho, Wo)


if __name__ == "__main__":
    key = jax.random.PRNGKey(0)
    k1, k2, k3, k4 = jax.random.split(key, 4)

    N, Cin, H, W = 2, 4, 16, 16
    Cout = 8

    x = jax.random.normal(k1, (N, Cin, H, W), jnp.float32)
    w = jax.random.normal(k2, (Cout, Cin, 4, 4), jnp.float32) * 0.1  # bias=False
    gamma = jax.random.uniform(k3, (Cout,), jnp.float32, 0.5, 1.5)   # BN weight
    beta = jax.random.normal(k4, (Cout,), jnp.float32) * 0.1         # BN bias

    out = jax.block_until_ready(jax.jit(unet_block_forward)(x, w, gamma, beta))

    # Pure-JAX reference (same semantics as the PyTorch module in training
    # mode).  Inputs are rounded through bf16 exactly like the kernel's MXU
    # operands so the comparison stays tight; accumulation is f32 in both.
    xr = x.astype(jnp.bfloat16).astype(jnp.float32)
    wr = w.astype(jnp.bfloat16).astype(jnp.float32)
    y_conv = lax.conv_general_dilated(
        xr, wr, window_strides=(2, 2), padding=((1, 1), (1, 1)),
        dimension_numbers=("NCHW", "OIHW", "NCHW"))
    mu = y_conv.mean(axis=(0, 2, 3), keepdims=True)
    var = y_conv.var(axis=(0, 2, 3), keepdims=True)
    z = ((y_conv - mu) * lax.rsqrt(var + 1e-5)
         * gamma[None, :, None, None] + beta[None, :, None, None])
    ref = jnp.where(z >= 0, z, 0.2 * z)

    assert out.shape == ref.shape, (out.shape, ref.shape)
    err = float(jnp.max(jnp.abs(out - ref)))
    assert err < 5e-2, f"max abs error {err}"
    print("KERNEL_OK")
</pallas_src>

<mosaic_0001>
module attributes {stable_mosaic.version = 11 : i64} {
  func.func @conv_stats_kernel_resident(%arg0: i32, %arg1: i32, %arg2: memref<128x128xbf16, #tpu.memory_space<vmem>>, %arg3: memref<128x128xbf16, #tpu.memory_space<vmem>>, %arg4: memref<128x128xbf16, #tpu.memory_space<vmem>>, %arg5: memref<8x128xf32, #tpu.memory_space<vmem>>, %arg6: memref<8x128xf32, #tpu.memory_space<vmem>>) attributes {dimension_semantics = [#tpu.dimension_semantics<parallel>, #tpu.dimension_semantics<arbitrary>], iteration_bounds = array<i64: 1, 2>, scalar_prefetch = 0 : i64, scratch_operands = 0 : i64, tpu.core_type = #tpu.core_type<tc>, window_params = [{transform_indices = @transform_0, window_bounds = array<i64: 128, 128>}, {pipeline_mode = #tpu.pipeline_mode<synchronous>, transform_indices = @transform_1, window_bounds = array<i64: 128, 128>}, {transform_indices = @transform_2, window_bounds = array<i64: 128, 128>}, {transform_indices = @transform_3, window_bounds = array<i64: 8, 128>}, {transform_indices = @transform_4, window_bounds = array<i64: 8, 128>}]} {
    %c0_i32 = arith.constant 0 : i32
    %0 = arith.cmpi eq, %arg1, %c0_i32 : i32
    %1 = arith.extui %0 : i1 to i32
    %c0_i32_0 = arith.constant 0 : i32
    %2 = arith.cmpi ne, %1, %c0_i32_0 : i32
    scf.if %2 {
      %cst_16 = arith.constant 0.000000e+00 : f32
      %18 = vector.broadcast %cst_16 : f32 to vector<8x128xf32>
      %c0_17 = arith.constant 0 : index
      %c0_18 = arith.constant 0 : index
      %19 = vector.load %arg5[%c0_17, %c0_18] : memref<8x128xf32, #tpu.memory_space<vmem>>, vector<8x128xf32>
      tpu.vector_store %arg5[%c0_17, %c0_18], %18 {strides = array<i32>} : memref<8x128xf32, #tpu.memory_space<vmem>>, vector<8x128xf32>,
      %cst_19 = arith.constant 0.000000e+00 : f32
      %20 = vector.broadcast %cst_19 : f32 to vector<8x128xf32>
      %c0_20 = arith.constant 0 : index
      %c0_21 = arith.constant 0 : index
      %21 = vector.load %arg6[%c0_20, %c0_21] : memref<8x128xf32, #tpu.memory_space<vmem>>, vector<8x128xf32>
      tpu.vector_store %arg6[%c0_20, %c0_21], %20 {strides = array<i32>} : memref<8x128xf32, #tpu.memory_space<vmem>>, vector<8x128xf32>,
    } else {
    }
    %c0 = arith.constant 0 : index
    %c0_1 = arith.constant 0 : index
    %3 = vector.load %arg2[%c0, %c0_1] : memref<128x128xbf16, #tpu.memory_space<vmem>>, vector<128x128xbf16>
    %c0_2 = arith.constant 0 : index
    %c0_3 = arith.constant 0 : index
    %4 = vector.load %arg3[%c0_2, %c0_3] : memref<128x128xbf16, #tpu.memory_space<vmem>>, vector<128x128xbf16>
    %cst = arith.constant dense<0.000000e+00> : vector<128x128xf32>
    %5 = tpu.matmul %3, %4, %cst {dimension_numbers = #tpu.dot_dimension_numbers<[1], [0], [0], [1], [0, 0, 1, 1], [], []>} : vector<128x128xbf16>, vector<128x128xbf16>, vector<128x128xf32> -> vector<128x128xf32>
    %6 = arith.truncf %5 : vector<128x128xf32> to vector<128x128xbf16>
    %c0_4 = arith.constant 0 : index
    %c0_5 = arith.constant 0 : index
    %7 = vector.load %arg4[%c0_4, %c0_5] : memref<128x128xbf16, #tpu.memory_space<vmem>>, vector<128x128xbf16>
    tpu.vector_store %arg4[%c0_4, %c0_5], %6 {strides = array<i32>} : memref<128x128xbf16, #tpu.memory_space<vmem>>, vector<128x128xbf16>,
    %8 = vector.shape_cast %5 : vector<128x128xf32> to vector<16x8x128xf32>
    %c0_6 = arith.constant 0 : index
    %c0_7 = arith.constant 0 : index
    %9 = vector.load %arg5[%c0_6, %c0_7] : memref<8x128xf32, #tpu.memory_space<vmem>>, vector<8x128xf32>
    %cst_8 = arith.constant dense<0.000000e+00> : vector<8x128xf32>
    %10 = vector.multi_reduction <add>, %8, %cst_8 [0] : vector<16x8x128xf32> to vector<8x128xf32>
    %11 = arith.addf %9, %10 : vector<8x128xf32>
    %c0_9 = arith.constant 0 : index
    %c0_10 = arith.constant 0 : index
    %12 = vector.load %arg5[%c0_9, %c0_10] : memref<8x128xf32, #tpu.memory_space<vmem>>, vector<8x128xf32>
    tpu.vector_store %arg5[%c0_9, %c0_10], %11 {strides = array<i32>} : memref<8x128xf32, #tpu.memory_space<vmem>>, vector<8x128xf32>,
    %c0_11 = arith.constant 0 : index
    %c0_12 = arith.constant 0 : index
    %13 = vector.load %arg6[%c0_11, %c0_12] : memref<8x128xf32, #tpu.memory_space<vmem>>, vector<8x128xf32>
    %14 = arith.mulf %8, %8 : vector<16x8x128xf32>
    %cst_13 = arith.constant dense<0.000000e+00> : vector<8x128xf32>
    %15 = vector.multi_reduction <add>, %14, %cst_13 [0] : vector<16x8x128xf32> to vector<8x128xf32>
    %16 = arith.addf %13, %15 : vector<8x128xf32>
    %c0_14 = arith.constant 0 : index
    %c0_15 = arith.constant 0 : index
    %17 = vector.load %arg6[%c0_14, %c0_15] : memref<8x128xf32, #tpu.memory_space<vmem>>, vector<8x128xf32>
    tpu.vector_store %arg6[%c0_14, %c0_15], %16 {strides = array<i32>} : memref<8x128xf32, #tpu.memory_space<vmem>>, vector<8x128xf32>,
    return
  }
  func.func @transform_0(%arg0: i32, %arg1: i32) -> (i32, i32) {
    %c2_i32 = arith.constant 2 : i32
    %0 = arith.muli %arg0, %c2_i32 : i32
    %1 = arith.addi %0, %arg1 : i32
    %c0_i32 = arith.constant 0 : i32
    %c0_i32_0 = arith.constant 0 : i32
    return %1, %c0_i32 : i32, i32
  }
  func.func @transform_1(%arg0: i32, %arg1: i32) -> (i32, i32) {
    %c0_i32 = arith.constant 0 : i32
    %c0_i32_0 = arith.constant 0 : i32
    %c0_i32_1 = arith.constant 0 : i32
    return %c0_i32, %c0_i32_0 : i32, i32
  }
  func.func @transform_2(%arg0: i32, %arg1: i32) -> (i32, i32) {
    %c2_i32 = arith.constant 2 : i32
    %0 = arith.muli %arg0, %c2_i32 : i32
    %1 = arith.addi %0, %arg1 : i32
    %c0_i32 = arith.constant 0 : i32
    %c0_i32_0 = arith.constant 0 : i32
    return %1, %c0_i32 : i32, i32
  }
  func.func @transform_3(%arg0: i32, %arg1: i32) -> (i32, i32) {
    %c0_i32 = arith.constant 0 : i32
    %c0_i32_0 = arith.constant 0 : i32
    return %arg0, %c0_i32 : i32, i32
  }
  func.func @transform_4(%arg0: i32, %arg1: i32) -> (i32, i32) {
    %c0_i32 = arith.constant 0 : i32
    %c0_i32_0 = arith.constant 0 : i32
    return %arg0, %c0_i32 : i32, i32
  }
}

module attributes {stable_mosaic.version = 11 : i64} {
  func.func @bn_lrelu_nchw_kernel(%arg0: i32, %arg1: i32, %arg2: memref<128x128xbf16, #tpu.memory_space<vmem>>, %arg3: memref<1x128xf32, #tpu.memory_space<vmem>>, %arg4: memref<1x128xf32, #tpu.memory_space<vmem>>, %arg5: memref<1x128x128xf32, #tpu.memory_space<vmem>>) attributes {dimension_semantics = [#tpu.dimension_semantics<parallel>, #tpu.dimension_semantics<parallel>], iteration_bounds = array<i64: 2, 1>, scalar_prefetch = 0 : i64, scratch_operands = 0 : i64, tpu.core_type = #tpu.core_type<tc>, window_params = [{transform_indices = @transform_0, window_bounds = array<i64: 128, 128>}, {pipeline_mode = #tpu.pipeline_mode<synchronous>, transform_indices = @transform_1, window_bounds = array<i64: 1, 128>}, {pipeline_mode = #tpu.pipeline_mode<synchronous>, transform_indices = @transform_2, window_bounds = array<i64: 1, 128>}, {transform_indices = @transform_3, window_bounds = array<i64: 1, 128, 128>}]} {
    %c0 = arith.constant 0 : index
    %c0_0 = arith.constant 0 : index
    %0 = vector.load %arg2[%c0, %c0_0] : memref<128x128xbf16, #tpu.memory_space<vmem>>, vector<128x128xbf16>
    %1 = arith.extf %0 : vector<128x128xbf16> to vector<128x128xf32>
    %c0_1 = arith.constant 0 : index
    %c0_2 = arith.constant 0 : index
    %2 = vector.load %arg3[%c0_1, %c0_2] : memref<1x128xf32, #tpu.memory_space<vmem>>, vector<1x128xf32>
    %3 = vector.broadcast %2 : vector<1x128xf32> to vector<128x128xf32>
    %4 = arith.mulf %1, %3 : vector<128x128xf32>
    %c0_3 = arith.constant 0 : index
    %c0_4 = arith.constant 0 : index
    %5 = vector.load %arg4[%c0_3, %c0_4] : memref<1x128xf32, #tpu.memory_space<vmem>>, vector<1x128xf32>
    %6 = vector.broadcast %5 : vector<1x128xf32> to vector<128x128xf32>
    %7 = arith.addf %4, %6 : vector<128x128xf32>
    %cst = arith.constant 0.000000e+00 : f32
    %8 = vector.broadcast %cst : f32 to vector<128x128xf32>
    %9 = arith.cmpf oge, %7, %8 : vector<128x128xf32>
    %cst_5 = arith.constant 2.000000e-01 : f32
    %10 = vector.broadcast %cst_5 : f32 to vector<128x128xf32>
    %11 = arith.mulf %10, %7 : vector<128x128xf32>
    %12 = arith.select %9, %7, %11 : vector<128x128xi1>, vector<128x128xf32>
    %13 = tpu.transpose %12, [1, 0] : vector<128x128xf32> -> vector<128x128xf32>
    %c0_6 = arith.constant 0 : index
    %c0_7 = arith.constant 0 : index
    %c0_8 = arith.constant 0 : index
    %14 = vector.load %arg5[%c0_6, %c0_7, %c0_8] : memref<1x128x128xf32, #tpu.memory_space<vmem>>, vector<1x128x128xf32>
    %15 = vector.shape_cast %14 : vector<1x128x128xf32> to vector<128x128xf32>
    %16 = vector.shape_cast %13 : vector<128x128xf32> to vector<1x128x128xf32>
    tpu.vector_store %arg5[%c0_6, %c0_7, %c0_8], %16 {strides = array<i32>} : memref<1x128x128xf32, #tpu.memory_space<vmem>>, vector<1x128x128xf32>,
    return
  }
  func.func @transform_0(%arg0: i32, %arg1: i32) -> (i32, i32) {
    %c1_i32 = arith.constant 1 : i32
    %0 = arith.muli %arg0, %c1_i32 : i32
    %1 = arith.addi %0, %arg1 : i32
    %c0_i32 = arith.constant 0 : i32
    %c0_i32_0 = arith.constant 0 : i32
    return %1, %c0_i32 : i32, i32
  }
  func.func @transform_1(%arg0: i32, %arg1: i32) -> (i32, i32) {
    %c0_i32 = arith.constant 0 : i32
    %c0_i32_0 = arith.constant 0 : i32
    %c0_i32_1 = arith.constant 0 : i32
    return %c0_i32, %c0_i32_0 : i32, i32
  }
  func.func @transform_2(%arg0: i32, %arg1: i32) -> (i32, i32) {
    %c0_i32 = arith.constant 0 : i32
    %c0_i32_0 = arith.constant 0 : i32
    %c0_i32_1 = arith.constant 0 : i32
    return %c0_i32, %c0_i32_0 : i32, i32
  }
  func.func @transform_3(%arg0: i32, %arg1: i32) -> (i32, i32, i32) {
    %c0_i32 = arith.constant 0 : i32
    %c0_i32_0 = arith.constant 0 : i32
    return %arg0, %c0_i32, %arg1 : i32, i32, i32
  }
}

</mosaic_0001>

<bundles_post_ra>
// kernel: unet_block_forward.3
= control target key start
LH: loop header
LB: loop body
LE: loop exit
PB: predicated region body
PF: predicated region fallthrough
CT: control target
= control target key end

     0   :  { %s566_s12 = smov 0   ;;  %s568_s13 = smov 0   ;;  %s674_s0 = inlined_call_operand.vmem [shape: bf16[256,128], index: 0, kind: input, shape index: {}]   ;;  %s675_s1 = inlined_call_operand.vmem [shape: f32[1,128], index: 1, kind: input, shape index: {}]   ;;  %s676_s2 = inlined_call_operand.vmem [shape: f32[1,128], index: 2, kind: input, shape index: {}]   ;;  %s677_s3 = inlined_call_operand.vmem [shape: f32[2,128,128], index: 3, kind: output, shape index: {}]  }
   0x1   :  { %s570_s14 = smov 0  }
   0x2 LB: > { %s25_s15 = sadd.s32 1, %s540_s13  ;;  %p449_p0 = scmp.ge.s32.totalorder %s544_s14, 1  ;;  %s544_s14 = sphi %s570_s14, %s13_s14   ;;  %s540_s13 = sphi %s568_s13, %s679_s13   ;;  %s536_s12 = sphi %s566_s12, %s678_s12  }
   0x3   : > { %p27_p1 = scmp.ge.s32.totalorder %s25_s15, 2  ;;  %p156_p2 = scmp.lt.s32.totalorder %s544_s14, 3 }
   0x5   : > { %s681_s15 = smov (%p27_p1, %s25_s15), 0  ;;  %p157_p3 = pnand %p449_p0, %p156_p2 }
   0x6   : > { %s450_s16 = sshll.u32 (!%p157_p3), %s536_s12, 4  ;;  %p192_p5 = scmp.lt.s32.totalorder (!%p157_p3), %s536_s12, 1 }
   0x7   : > { %160 = sbr.rel (%p157_p3) target bundleno = 311 (0x137), region = 32  ;;  %p186_p4 = scmp.lt.s32.totalorder (!%p157_p3), %s450_s16, 31 }
   0xc   : > { %s683_s16 = smov (!%p186_p4, %s450_s16), 31  ;;  %v595_v0 = vld [vmem:[%s675_s1] ss:$0 sm:$0xff]  ;;  %s685_s12 = smov (!%p192_p5, %s536_s12), 1 }
   0xd   : > { %s451_s17 = sshll.u32 %s683_s16, 2  ;;  %v601_v3 = vld [vmem:[%s676_s2] ss:$0 sm:$0xff]  ;;  %s456_s25 = sshll.u32 %s685_s12, 7 }
   0xe   : > { %s590_s20 = scalar_lea.vmem %s674_s0, %s451_s17  ;;  %s647_s28 = scalar_lea.vmem %s677_s3, %s456_s25 }
   0xf   : > { %v458_v1 = vld [vmem:[%s590_s20] sm:$0xff]   ;;  %v489_v7 = vld [vmem:[%s590_s20 + $0x8] sm:$0xff]   ;;  %v490_v20 = vld [vmem:[%s590_s20 + $0x10] sm:$0xff]  }
  0x10   : > { %v459_v2 = vunpack.c.l.bf16 %v458_v1  ;;  %v460_v4 = vunpack.c.h.bf16 %v458_v1  ;;  %v463_v11 = vunpack.c.l.bf16 %v489_v7  ;;  %v464_v17 = vunpack.c.h.bf16 %v489_v7  ;;  %v491_v31 = vld [vmem:[%s590_s20 + $0x18] sm:$0xff]   ;;  %v492_v42 = vld [vmem:[%s590_s20 + $0x20] sm:$0xff]   ;;  %v493_v53 = vld [vmem:[%s590_s20 + $0x28] sm:$0xff]  }
  0x11   : > { %v467_v23 = vunpack.c.l.bf16 %v490_v20  ;;  %v468_v28 = vunpack.c.h.bf16 %v490_v20  ;;  %v471_v34 = vunpack.c.l.bf16 %v491_v31  ;;  %v472_v39 = vunpack.c.h.bf16 %v491_v31  ;;  %v494_v1 = vld [vmem:[%s590_s20 + $0x30] sm:$0xff]  }
  0x12   : > { %v236_v5 = vmul.f32 %v595_v0, %v459_v2  ;;  %v237_v6 = vmul.f32 %v595_v0, %v460_v4  ;;  %v238_v14 = vmul.f32 %v595_v0, %v463_v11  ;;  %v239_v19 = vmul.f32 %v595_v0, %v464_v17 }
  0x13   : > { %v240_v25 = vmul.f32 %v595_v0, %v467_v23  ;;  %v241_v30 = vmul.f32 %v595_v0, %v468_v28  ;;  %v242_v36 = vmul.f32 %v595_v0, %v471_v34  ;;  %v243_v41 = vmul.f32 %v595_v0, %v472_v39 }
  0x14   : > { %v256_v8 = vadd.f32 %v601_v3, %v236_v5  ;;  %v257_v10 = vadd.f32 %v601_v3, %v237_v6  ;;  %v258_v16 = vadd.f32 %v601_v3, %v238_v14  ;;  %v259_v22 = vadd.f32 %v601_v3, %v239_v19 }
  0x15   : > { %v260_v27 = vadd.f32 %v601_v3, %v240_v25  ;;  %v261_v33 = vadd.f32 %v601_v3, %v241_v30  ;;  %v262_v38 = vadd.f32 %v601_v3, %v242_v36  ;;  %v263_v44 = vadd.f32 %v601_v3, %v243_v41 }
  0x16   : > { %vm272_vm0 = vcmp.ge.f32.partialorder %v256_v8, 0.0  ;;  %v288_v9 = vmul.f32 0.2, %v256_v8  ;;  %v289_v13 = vmul.f32 0.2, %v257_v10  ;;  %vm273_vm1 = vcmp.ge.f32.partialorder %v257_v10, 0.0 }
  0x17   : > { %v290_v18 = vmul.f32 0.2, %v258_v16  ;;  %vm274_vm2 = vcmp.ge.f32.partialorder %v258_v16, 0.0  ;;  %v291_v24 = vmul.f32 0.2, %v259_v22  ;;  %vm275_vm3 = vcmp.ge.f32.partialorder %v259_v22, 0.0 }
  0x18   : > { %v304_v12 = vsel %vm272_vm0, %v256_v8, %v288_v9  ;;  %v305_v15 = vsel %vm273_vm1, %v257_v10, %v289_v13  ;;  %v292_v29 = vmul.f32 0.2, %v260_v27  ;;  %vm276_vm4 = vcmp.ge.f32.partialorder %v260_v27, 0.0  ;;  %v495_v13 = vld [vmem:[%s590_s20 + $0x38] sm:$0xff]  }
  0x19   : > { %320 = vxpose.xlu0.b32.start [1/16] %v304_v12, 128  ;;  %v306_v21 = vsel %vm274_vm2, %v258_v16, %v290_v18  ;;  %v307_v26 = vsel %vm275_vm3, %v259_v22, %v291_v24  ;;  %v293_v35 = vmul.f32 0.2, %v261_v33  ;;  %vm277_vm5 = vcmp.ge.f32.partialorder %v261_v33, 0.0 }
  0x1a   : > { %v308_v32 = vsel %vm276_vm4, %v260_v27, %v292_v29  ;;  %v294_v40 = vmul.f32 0.2, %v262_v38  ;;  %vm278_vm6 = vcmp.ge.f32.partialorder %v262_v38, 0.0  ;;  %v475_v45 = vunpack.c.l.bf16 %v492_v42 }
  0x1b   : > { %v309_v37 = vsel %vm277_vm5, %v261_v33, %v293_v35  ;;  %v295_v46 = vmul.f32 0.2, %v263_v44  ;;  %vm279_vm7 = vcmp.ge.f32.partialorder %v263_v44, 0.0  ;;  %v476_v50 = vunpack.c.h.bf16 %v492_v42 }
  0x1c   : > { %v310_v43 = vsel %vm278_vm6, %v262_v38, %v294_v40  ;;  %v244_v47 = vmul.f32 %v595_v0, %v475_v45  ;;  %v479_v56 = vunpack.c.l.bf16 %v493_v53  ;;  %v480_v61 = vunpack.c.h.bf16 %v493_v53 }
  0x1d   : > { %v311_v48 = vsel %vm279_vm7, %v263_v44, %v295_v46  ;;  %v245_v52 = vmul.f32 %v595_v0, %v476_v50  ;;  %v483_v5 = vunpack.c.l.bf16 %v494_v1  ;;  %v484_v10 = vunpack.c.h.bf16 %v494_v1 }
  0x1e   : > { %v264_v49 = vadd.f32 %v601_v3, %v244_v47  ;;  %v246_v58 = vmul.f32 %v595_v0, %v479_v56  ;;  %v247_v63 = vmul.f32 %v595_v0, %v480_v61  ;;  %v487_v16 = vunpack.c.l.bf16 %v495_v13 }
  0x1f   : > { %v265_v55 = vadd.f32 %v601_v3, %v245_v52  ;;  %v248_v7 = vmul.f32 %v595_v0, %v483_v5  ;;  %v249_v12 = vmul.f32 %v595_v0, %v484_v10 }
  0x20   : > { %v296_v51 = vmul.f32 0.2, %v264_v49  ;;  %vm280_vm8 = vcmp.ge.f32.partialorder %v264_v49, 0.0  ;;  %v266_v60 = vadd.f32 %v601_v3, %v246_v58  ;;  %v267_v4 = vadd.f32 %v601_v3, %v247_v63 }
  0x21   : > { %321 = vxpose.xlu0.b32.cont [2/16] %v305_v15, 128  ;;  %v297_v57 = vmul.f32 0.2, %v265_v55  ;;  %vm281_vm9 = vcmp.ge.f32.partialorder %v265_v55, 0.0  ;;  %v268_v9 = vadd.f32 %v601_v3, %v248_v7  ;;  %v269_v15 = vadd.f32 %v601_v3, %v249_v12 }
  0x22   : > { %v312_v54 = vsel %vm280_vm8, %v264_v49, %v296_v51  ;;  %v298_v62 = vmul.f32 0.2, %v266_v60  ;;  %vm282_vm10 = vcmp.ge.f32.partialorder %v266_v60, 0.0  ;;  %v299_v6 = vmul.f32 0.2, %v267_v4 }
  0x23   : > { %v313_v59 = vsel %vm281_vm9, %v265_v55, %v297_v57  ;;  %vm283_vm11 = vcmp.ge.f32.partialorder %v267_v4, 0.0  ;;  %v300_v11 = vmul.f32 0.2, %v268_v9  ;;  %vm284_vm12 = vcmp.ge.f32.partialorder %v268_v9, 0.0 }
  0x24   : > { %v314_v2 = vsel %vm282_vm10, %v266_v60, %v298_v62  ;;  %v315_v8 = vsel %vm283_vm11, %v267_v4, %v299_v6  ;;  %v301_v17 = vmul.f32 0.2, %v269_v15  ;;  %v250_v18 = vmul.f32 %v595_v0, %v487_v16 }
  0x25   : > { %v316_v14 = vsel %vm284_vm12, %v268_v9, %v300_v11  ;;  %vm285_vm13 = vcmp.ge.f32.partialorder %v269_v15, 0.0 }
  0x26   : > { %v317_v19 = vsel %vm285_vm13, %v269_v15, %v301_v17  ;;  %v270_v20 = vadd.f32 %v601_v3, %v250_v18 }
  0x28   : > { %v302_v22 = vmul.f32 0.2, %v270_v20  ;;  %vm286_vm14 = vcmp.ge.f32.partialorder %v270_v20, 0.0 }
  0x29   : > { %322 = vxpose.xlu0.b32.cont [3/16] %v306_v21, 128  ;;  %v488_v21 = vunpack.c.h.bf16 %v495_v13 }
  0x2a   : > { %v318_v24 = vsel %vm286_vm14, %v270_v20, %v302_v22 }
  0x2b   : > { %v251_v23 = vmul.f32 %v595_v0, %v488_v21 }
  0x2d   : > { %v271_v25 = vadd.f32 %v601_v3, %v251_v23 }
  0x2f   : > { %vm287_vm15 = vcmp.ge.f32.partialorder %v271_v25, 0.0 }
  0x31   : > { %323 = vxpose.xlu0.b32.cont [4/16] %v307_v26, 128  ;;  %v303_v26 = vmul.f32 0.2, %v271_v25 }
  0x33   : > { %v319_v27 = vsel %vm287_vm15, %v271_v25, %v303_v26 }
  0x39   : > { %324 = vxpose.xlu0.b32.cont [5/16] %v308_v32, 128 }
  0x41   : > { %325 = vxpose.xlu0.b32.cont [6/16] %v309_v37, 128 }
  0x49   : > { %326 = vxpose.xlu0.b32.cont [7/16] %v310_v43, 128 }
  0x51   : > { %327 = vxpose.xlu0.b32.cont [8/16] %v311_v48, 128 }
  0x59   : > { %328 = vxpose.xlu0.b32.cont [9/16] %v312_v54, 128 }
  0x61   : > { %329 = vxpose.xlu0.b32.cont [10/16] %v313_v59, 128 }
  0x69   : > { %330 = vxpose.xlu0.b32.cont [11/16] %v314_v2, 128 }
  0x71   : > { %331 = vxpose.xlu0.b32.cont [12/16] %v315_v8, 128 }
  0x79   : > { %332 = vxpose.xlu0.b32.cont [13/16] %v316_v14, 128 }
  0x81   : > { %333 = vxpose.xlu0.b32.cont [14/16] %v317_v19, 128 }
  0x89   : > { %334 = vxpose.xlu0.b32.cont [15/16] %v318_v24, 128 }
  0x91   : > { %335 = vxpose.xlu0.b32.end [16/16] %v319_v27, 128 }
  0xbd   : > { %v336_v0 = vpop.trf.xlu0 }
  0xbe   : > { %352 = vst [vmem:[%s647_s28] sm:$0xff] %v336_v0 }
  0xc5   : > { %v337_v3 = vpop.trf.xlu0 }
  0xc6   : > { %353 = vst [vmem:[%s647_s28 + $0x8] sm:$0xff] %v337_v3 }
  0xcd   : > { %v338_v28 = vpop.trf.xlu0 }
  0xce   : > { %354 = vst [vmem:[%s647_s28 + $0x10] sm:$0xff] %v338_v28 }
  0xd5   : > { %v339_v29 = vpop.trf.xlu0 }
  0xd6   : > { %355 = vst [vmem:[%s647_s28 + $0x18] sm:$0xff] %v339_v29 }
  0xdd   : > { %v340_v30 = vpop.trf.xlu0 }
  0xde   : > { %356 = vst [vmem:[%s647_s28 + $0x20] sm:$0xff] %v340_v30 }
  0xe5   : > { %v341_v31 = vpop.trf.xlu0 }
  0xe6   : > { %357 = vst [vmem:[%s647_s28 + $0x28] sm:$0xff] %v341_v31 }
  0xed   : > { %v342_v32 = vpop.trf.xlu0 }
  0xee   : > { %358 = vst [vmem:[%s647_s28 + $0x30] sm:$0xff] %v342_v32 }
  0xf5   : > { %v343_v33 = vpop.trf.xlu0 }
  0xf6   : > { %359 = vst [vmem:[%s647_s28 + $0x38] sm:$0xff] %v343_v33 }
  0xfd   : > { %v344_v34 = vpop.trf.xlu0 }
  0xfe   : > { %360 = vst [vmem:[%s647_s28 + $0x40] sm:$0xff] %v344_v34 }
 0x105   : > { %v345_v35 = vpop.trf.xlu0 }
 0x106   : > { %361 = vst [vmem:[%s647_s28 + $0x48] sm:$0xff] %v345_v35 }
 0x10d   : > { %v346_v36 = vpop.trf.xlu0 }
 0x10e   : > { %362 = vst [vmem:[%s647_s28 + $0x50] sm:$0xff] %v346_v36 }
 0x115   : > { %v347_v37 = vpop.trf.xlu0 }
 0x116   : > { %363 = vst [vmem:[%s647_s28 + $0x58] sm:$0xff] %v347_v37 }
 0x11d   : > { %v348_v38 = vpop.trf.xlu0 }
 0x11e   : > { %364 = vst [vmem:[%s647_s28 + $0x60] sm:$0xff] %v348_v38 }
 0x125   : > { %v349_v39 = vpop.trf.xlu0 }
 0x126   : > { %365 = vst [vmem:[%s647_s28 + $0x68] sm:$0xff] %v349_v39 }
 0x12d   : > { %v350_v40 = vpop.trf.xlu0 }
 0x12e   : > { %366 = vst [vmem:[%s647_s28 + $0x70] sm:$0xff] %v350_v40 }
 0x135   : > { %v351_v41 = vpop.trf.xlu0 }
 0x136   : > { %367 = vst [vmem:[%s647_s28 + $0x78] sm:$0xff] %v351_v41 }
 0x137 PF: > { %s13_s14 = sadd.s32 1, %s544_s14   ;;  %s678_s12 = smov %s540_s13 }
 0x138   : > { %p10_p6 = scmp.ge.s32.totalorder %s13_s14, 4   ;;  %s679_s13 = smov %s681_s15 }
 0x13a   :  { %12 = sbr.rel (!%p10_p6) target bundleno = 2 (0x2), region = 62 }

// kernel: unet_block_forward.2
= control target key start
LH: loop header
LB: loop body
LE: loop exit
PB: predicated region body
PF: predicated region fallthrough
CT: control target
= control target key end

     0   :  { %s892_s15 = smov 0   ;;  %s894_s16 = smov 0   ;;  %s993_s0 = inlined_call_operand.vmem [shape: bf16[256,128], index: 0, kind: input, shape index: {}]   ;;  %s994_s1 = inlined_call_operand.vmem [shape: bf16[128,128], index: 1, kind: input, shape index: {}]   ;;  %s995_s2 = inlined_call_operand.vmem [shape: bf16[256,128], index: 2, kind: output, shape index: {0}]   ;;  %s996_s3 = inlined_call_operand.vmem [shape: f32[8,128], index: 3, kind: output, shape index: {1}]   ;;  %s997_s4 = inlined_call_operand.vmem [shape: f32[8,128], index: 4, kind: output, shape index: {2}]  }
   0x1   :  { %s896_s17 = smov 0  }
   0x2 LB: > { %s24_s18 = sadd.s32 1, %s860_s16  ;;  %p656_p0 = scmp.ge.s32.totalorder %s864_s17, 1  ;;  %s864_s17 = sphi %s896_s17, %s15_s17   ;;  %s860_s16 = sphi %s894_s16, %s999_s16   ;;  %s856_s15 = sphi %s892_s15, %s998_s15  }
   0x3   : > { %p25_p1 = scmp.ge.s32.totalorder %s24_s18, 2  ;;  %p192_p2 = scmp.lt.s32.totalorder %s864_s17, 3 }
   0x5   : > { %s1001_s18 = smov (%p25_p1, %s24_s18), 0  ;;  %p193_p3 = pnand %p656_p0, %p192_p2 }
   0x6   : > { %s657_s19 = sshll.u32 (!%p193_p3), %s856_s15, 4  ;;  %p661_p5 = scmp.ne.s32.totalorder (!%p193_p3), %s856_s15, 0 }
   0x7   : > { %196 = sbr.rel (%p193_p3) target bundleno = 233 (0xe9), region = 28  ;;  %p233_p4 = scmp.lt.s32.totalorder (!%p193_p3), %s657_s19, 31 }
   0xc   : > { %s1003_s19 = smov (!%p233_p4, %s657_s19), 31  ;;  %261 = sbr.rel (%p661_p5) target bundleno = 20 (0x14), region = 32 }
   0xd   : > { %s658_s20 = sshll.u32 %s1003_s19, 2 }
   0xe   : > { %s913_s23 = scalar_lea.vmem %s993_s0, %s658_s20  ;;  %s918_s26 = scalar_lea.vmem %s995_s2, %s658_s20 }
  0x11   : > { %v866_v0 = vmov 0.0  }
  0x12   : > { %262 = vst [vmem:[%s996_s3] sm:$0xff] %v866_v0 }
  0x13   : > { %263 = vst [vmem:[%s997_s4] sm:$0xff] %v866_v0 }
  0x14 PF: > { %v745_v1 = vld [vmem:[%s994_s1 + $0x38] sm:$0xff]  ;;  %v744_v2 = vld [vmem:[%s994_s1 + $0x30] sm:$0xff]  ;;  %v743_v3 = vld [vmem:[%s994_s1 + $0x28] sm:$0xff] }
  0x15   : > { %392 = vmatpush.bf16.msra.mxu0 %v745_v1  ;;  %793 = vmatpush.bf16.msra.mxu1 %v745_v1  ;;  %v742_v4 = vld [vmem:[%s994_s1 + $0x20] sm:$0xff]  ;;  %v741_v5 = vld [vmem:[%s994_s1 + $0x18] sm:$0xff]  ;;  %v740_v6 = vld [vmem:[%s994_s1 + $0x10] sm:$0xff] }
  0x16   : > { %794 = vmatpush.bf16.msra.mxu2 %v745_v1  ;;  %795 = vmatpush.bf16.msra.mxu3 %v745_v1  ;;  %v739_v7 = vld [vmem:[%s994_s1 + $0x8] sm:$0xff]  ;;  %v738_v8 = vld [vmem:[%s994_s1] sm:$0xff]  ;;  %v732_v10 = vld [vmem:[%s913_s23 + $0x10] sm:$0xff] }
  0x17   : > { %v730_v9 = vld [vmem:[%s913_s23] sm:$0xff]  ;;  %v736_v12 = vld [vmem:[%s913_s23 + $0x30] sm:$0xff]  ;;  %v731_v13 = vld [vmem:[%s913_s23 + $0x8] sm:$0xff] }
  0x18   : > { %v734_v11 = vld [vmem:[%s913_s23 + $0x20] sm:$0xff]  ;;  %v733_v14 = vld [vmem:[%s913_s23 + $0x18] sm:$0xff]  ;;  %v735_v15 = vld [vmem:[%s913_s23 + $0x28] sm:$0xff] }
  0x19   : > { %393 = vmatpush.bf16.msra.mxu0 %v744_v2  ;;  %796 = vmatpush.bf16.msra.mxu1 %v744_v2  ;;  %v737_v16 = vld [vmem:[%s913_s23 + $0x38] sm:$0xff] }
  0x1a   : > { %797 = vmatpush.bf16.msra.mxu2 %v744_v2  ;;  %798 = vmatpush.bf16.msra.mxu3 %v744_v2 }
  0x1d   : > { %394 = vmatpush.bf16.msra.mxu0 %v743_v3  ;;  %799 = vmatpush.bf16.msra.mxu1 %v743_v3 }
  0x1e   : > { %800 = vmatpush.bf16.msra.mxu2 %v743_v3  ;;  %801 = vmatpush.bf16.msra.mxu3 %v743_v3 }
  0x21   : > { %395 = vmatpush.bf16.msra.mxu0 %v742_v4  ;;  %802 = vmatpush.bf16.msra.mxu1 %v742_v4 }
  0x22   : > { %803 = vmatpush.bf16.msra.mxu2 %v742_v4  ;;  %804 = vmatpush.bf16.msra.mxu3 %v742_v4 }
  0x25   : > { %396 = vmatpush.bf16.msra.mxu0 %v741_v5  ;;  %805 = vmatpush.bf16.msra.mxu1 %v741_v5 }
  0x26   : > { %806 = vmatpush.bf16.msra.mxu2 %v741_v5  ;;  %807 = vmatpush.bf16.msra.mxu3 %v741_v5 }
  0x29   : > { %397 = vmatpush.bf16.msra.mxu0 %v740_v6  ;;  %808 = vmatpush.bf16.msra.mxu1 %v740_v6 }
  0x2a   : > { %809 = vmatpush.bf16.msra.mxu2 %v740_v6  ;;  %810 = vmatpush.bf16.msra.mxu3 %v740_v6 }
  0x2d   : > { %398 = vmatpush.bf16.msra.mxu0 %v739_v7  ;;  %811 = vmatpush.bf16.msra.mxu1 %v739_v7 }
  0x2e   : > { %812 = vmatpush.bf16.msra.mxu2 %v739_v7  ;;  %813 = vmatpush.bf16.msra.mxu3 %v739_v7 }
  0x31   : > { %399 = vmatpush.bf16.msra.mxu0 %v738_v8  ;;  %814 = vmatpush.bf16.msra.mxu1 %v738_v8 }
  0x32   : > { %815 = vmatpush.bf16.msra.mxu2 %v738_v8  ;;  %816 = vmatpush.bf16.msra.mxu3 %v738_v8 }
  0x34   : > { %400 = vmatmul.bf16.vlgmr.msra.gmra.mxu0 %v730_v9  ;;  %410 = vmatmul.bf16.vlgmr.msra.gmra.mxu1 %v732_v10 }
  0x35   : > { %420 = vmatmul.bf16.vlgmr.msra.gmra.mxu2 %v734_v11  ;;  %430 = vmatmul.bf16.vlgmr.msra.gmra.mxu3 %v736_v12 }
  0x44   : > { %405 = vmatmul.bf16.gmra.mxu0 %v731_v13  ;;  %415 = vmatmul.bf16.gmra.mxu1 %v733_v14 }
  0x45   : > { %425 = vmatmul.bf16.gmra.mxu2 %v735_v15  ;;  %435 = vmatmul.bf16.gmra.mxu3 %v737_v16 }
  0xb1   : > { %v401_v17 = vpop.f32.mrf.mxu0  ;;  %v411_v18 = vpop.f32.mrf.mxu1 }
  0xb2   : > { %v492_v32 = vmul.f32 %v401_v17, %v401_v17  ;;  %v496_v46 = vmul.f32 %v411_v18, %v411_v18 }
  0xb8   : > { %v421_v19 = vpop.f32.mrf.mxu2  ;;  %v958_v20 = vpop.f32.mrf.mxu3 }
  0xb9   : > { %v403_v21 = vpop.f32.mrf.mxu0  ;;  %v413_v22 = vpop.f32.mrf.mxu1  ;;  %v500_v62 = vmul.f32 %v421_v19, %v421_v19  ;;  %v504_v10 = vmul.f32 %v958_v20, %v958_v20 }
  0xba   : > { %v749_v23 = vpack.c.bf16 %v403_v21, %v401_v17  ;;  %v759_v24 = vpack.c.bf16 %v413_v22, %v411_v18  ;;  %v493_v31 = vmul.f32 %v403_v21, %v403_v21  ;;  %v474_v34 = vadd.f32 %v403_v21, %v401_v17 }
  0xbb   : > { %v497_v49 = vmul.f32 %v413_v22, %v413_v22 }
  0xbc   : > { %750 = vst [vmem:[%s918_s26] sm:$0xff] %v749_v23   ;;  %v508_v35 = vadd.f32 %v493_v31, %v492_v32 }
  0xbd   : > { %787 = vst [vmem:[%s918_s26 + $0x10] sm:$0xff] %v759_v24   ;;  %v491_v24 = vld [vmem:[%s997_s4] sm:$0xff] }
  0xc0   : > { %v423_v25 = vpop.f32.mrf.mxu2  ;;  %v433_v26 = vpop.f32.mrf.mxu3 }
  0xc1   : > { %v406_v27 = vpop.f32.mrf.mxu0  ;;  %v416_v28 = vpop.f32.mrf.mxu1  ;;  %v769_v29 = vpack.c.bf16 %v423_v25, %v421_v19  ;;  %v779_v30 = vpack.c.bf16 %v433_v26, %v958_v20  ;;  %v501_v1 = vmul.f32 %v423_v25, %v423_v25  ;;  %v505_v13 = vmul.f32 %v433_v26, %v433_v26 }
  0xc2   : > { %v494_v33 = vmul.f32 %v406_v27, %v406_v27  ;;  %v475_v36 = vadd.f32 %v474_v34, %v406_v27  ;;  %v498_v52 = vmul.f32 %v416_v28, %v416_v28 }
  0xc3   : > { %789 = vst [vmem:[%s918_s26 + $0x20] sm:$0xff] %v769_v29  }
  0xc4   : > { %791 = vst [vmem:[%s918_s26 + $0x30] sm:$0xff] %v779_v30   ;;  %v509_v39 = vadd.f32 %v508_v35, %v494_v33 }
  0xc8   : > { %v426_v37 = vpop.f32.mrf.mxu2  ;;  %v436_v38 = vpop.f32.mrf.mxu3 }
  0xc9   : > { %v408_v40 = vpop.f32.mrf.mxu0  ;;  %v418_v41 = vpop.f32.mrf.mxu1  ;;  %v502_v5 = vmul.f32 %v426_v37, %v426_v37  ;;  %v506_v17 = vmul.f32 %v436_v38, %v436_v38 }
  0xca   : > { %v754_v42 = vpack.c.bf16 %v408_v40, %v406_v27  ;;  %v476_v43 = vadd.f32 %v475_v36, %v408_v40  ;;  %v495_v44 = vmul.f32 %v408_v40, %v408_v40  ;;  %v764_v45 = vpack.c.bf16 %v418_v41, %v416_v28 }
  0xcb   : > { %v499_v60 = vmul.f32 %v418_v41, %v418_v41 }
  0xcc   : > { %786 = vst [vmem:[%s918_s26 + $0x8] sm:$0xff] %v754_v42   ;;  %v477_v47 = vadd.f32 %v476_v43, %v411_v18  ;;  %v510_v48 = vadd.f32 %v509_v39, %v495_v44 }
  0xcd   : > { %788 = vst [vmem:[%s918_s26 + $0x18] sm:$0xff] %v764_v45  }
  0xce   : > { %v511_v50 = vadd.f32 %v510_v48, %v496_v46  ;;  %v478_v51 = vadd.f32 %v477_v47, %v413_v22 }
  0xd0   : > { %v479_v53 = vadd.f32 %v478_v51, %v416_v28  ;;  %v512_v54 = vadd.f32 %v511_v50, %v497_v49  ;;  %v428_v55 = vpop.f32.mrf.mxu2  ;;  %v438_v56 = vpop.f32.mrf.mxu3 }
  0xd1   : > { %v774_v57 = vpack.c.bf16 %v428_v55, %v426_v37  ;;  %v784_v58 = vpack.c.bf16 %v438_v56, %v436_v38  ;;  %v503_v9 = vmul.f32 %v428_v55, %v428_v55  ;;  %v507_v23 = vmul.f32 %v438_v56, %v438_v56 }
  0xd2   : > { %v480_v59 = vadd.f32 %v479_v53, %v418_v41  ;;  %v513_v61 = vadd.f32 %v512_v54, %v498_v52 }
  0xd3   : > { %790 = vst [vmem:[%s918_s26 + $0x28] sm:$0xff] %v774_v57  }
  0xd4   : > { %v481_v63 = vadd.f32 %v480_v59, %v421_v19  ;;  %v514_v0 = vadd.f32 %v513_v61, %v499_v60  ;;  %792 = vst [vmem:[%s918_s26 + $0x38] sm:$0xff] %v784_v58   ;;  %v473_v19 = vld [vmem:[%s996_s3] sm:$0xff] }
  0xd6   : > { %v515_v2 = vadd.f32 %v514_v0, %v500_v62  ;;  %v482_v3 = vadd.f32 %v481_v63, %v423_v25 }
  0xd8   : > { %v483_v4 = vadd.f32 %v482_v3, %v426_v37  ;;  %v516_v6 = vadd.f32 %v515_v2, %v501_v1 }
  0xda   : > { %v517_v7 = vadd.f32 %v516_v6, %v502_v5  ;;  %v484_v8 = vadd.f32 %v483_v4, %v428_v55 }
  0xdc   : > { %v485_v11 = vadd.f32 %v484_v8, %v958_v20  ;;  %v518_v12 = vadd.f32 %v517_v7, %v503_v9 }
  0xde   : > { %v519_v14 = vadd.f32 %v518_v12, %v504_v10  ;;  %v486_v15 = vadd.f32 %v485_v11, %v433_v26 }
  0xe0   : > { %v487_v16 = vadd.f32 %v486_v15, %v436_v38  ;;  %v520_v18 = vadd.f32 %v519_v14, %v505_v13 }
  0xe2   : > { %v521_v21 = vadd.f32 %v520_v18, %v506_v17  ;;  %v488_v22 = vadd.f32 %v487_v16, %v438_v56 }
  0xe4   : > { %v489_v25 = vadd.f32 %v488_v22, %v473_v19  ;;  %v522_v20 = vadd.f32 %v521_v21, %v507_v23 }
  0xe6   : > { %490 = vst [vmem:[%s996_s3] sm:$0xff] %v489_v25  ;;  %v523_v26 = vadd.f32 %v522_v20, %v491_v24 }
  0xe8   : > { %524 = vst [vmem:[%s997_s4] sm:$0xff] %v523_v26 }
  0xe9 PF: > { %s15_s17 = sadd.s32 1, %s864_s17   ;;  %s998_s15 = smov %s860_s16 }
  0xea   : > { %p12_p6 = scmp.ge.s32.totalorder %s15_s17, 4   ;;  %s999_s16 = smov %s1001_s18 }
  0xec   :  { %14 = sbr.rel (!%p12_p6) target bundleno = 2 (0x2), region = 86 }

</bundles_post_ra>
